<compile_context>
chip_gen: v7x
topology: tpu7x:2x2x1
jax: 0.10.0
libtpu: 0.0.40
codegen_flags: <defaults>
</compile_context>

<pallas_src>
import jax
import jax.numpy as jnp
from jax.experimental import pallas as pl
from jax.experimental.pallas import tpu as pltpu

_LANE = 128
_SUBLANE = 8
_BYTES_PER_BLOCK_BUF = 1 * 1024 * 1024  # ~1 MiB per block buffer


def _choose_rl(C, H, W):
    """Pick a (R, L) factorization of C*H*W with a lane-dense last dim."""
    for R, L in ((C * H, W), (C, H * W), (1, C * H * W)):
        if L % _LANE == 0:
            return R, L
    return C * H, W  # fallback: full-dim blocks will be used


def _choose_tiles(R, L, itemsize):
    """Block shape (tile_r, tile_l): (8,128)-legal and <= ~1 MiB per buffer."""
    if L % _LANE == 0:
        tile_l = min(L, 2048)           # large multiple of 128 -> unmasked stores
    else:
        tile_l = L                      # full dim (legal even if not mult of 128)
    max_rows = max(_SUBLANE,
                   (_BYTES_PER_BLOCK_BUF // (itemsize * tile_l)) // _SUBLANE * _SUBLANE)
    tile_r = R if R <= max_rows else max_rows
    return tile_r, tile_l


def _transform(x, var_change, make_unit_input, eps_box):
    """C&W variable change -> clamp -> [0,255] rescale (compile-time branches)."""
    if var_change:
        x = (0.5 / (1.0 - eps_box)) * (jnp.tanh(x) + (1.0 - eps_box))
    x = jnp.clip(x, 0.0, 1.0)
    if make_unit_input:
        x = x * 255.0
    return x


def _build_kernel(n_images, n_deltas, delta_idx, var_change, make_unit_input, eps_box):
    """Kernel over refs = (img_0..img_{n-1}, delta_0..delta_{m-1}, out_0..out_{n-1})."""
    def kernel(*refs):
        img_refs = refs[:n_images]
        del_refs = refs[n_images:n_images + n_deltas]
        out_refs = refs[n_images + n_deltas:]
        dvals = [d[...] for d in del_refs]          # read each delta tile once
        for i in range(n_images):
            x = img_refs[i][...]
            if delta_idx[i] is not None:
                x = x + dvals[delta_idx[i]]
            y = _transform(x, var_change, make_unit_input, eps_box)
            out_refs[i][...] = y.astype(out_refs[i].dtype)
    return kernel


def _preprocess_images(images, deltas, delta_idx, *, var_change, make_unit_input, eps_box):
    """images: list of (B,C,H,W) (same shape). deltas: list of (1,C,H,W) (or (C,H,W)).
    delta_idx[i] is the index into `deltas` added to images[i], or None."""
    images = [jnp.asarray(im) for im in images]
    B, C, H, W = images[0].shape
    dtype = images[0].dtype
    itemsize = jnp.dtype(dtype).itemsize

    R, L = _choose_rl(C, H, W)
    tile_r, tile_l = _choose_tiles(R, L, itemsize)
    nR = pl.cdiv(R, tile_r)
    nL = pl.cdiv(L, tile_l)
    grid = (nR, nL, B)                 # batch innermost: delta block index is constant
                                       # across consecutive steps -> no re-DMA of delta

    imgs3d = [im.reshape(B, R, L) for im in images]
    dels3d = [jnp.reshape(jnp.asarray(d), (1, R, L)).astype(dtype) for d in deltas]

    blk = (1, tile_r, tile_l)
    img_spec = pl.BlockSpec(blk, lambda r, l, b: (b, r, l))
    del_spec = pl.BlockSpec(blk, lambda r, l, b: (0, r, l))   # ignores batch axis

    kernel = _build_kernel(len(images), len(deltas), tuple(delta_idx),
                           var_change, make_unit_input, float(eps_box))

    outs = pl.pallas_call(
        kernel,
        out_shape=[jax.ShapeDtypeStruct((B, R, L), im.dtype) for im in images],
        grid=grid,
        in_specs=[img_spec] * len(images) + [del_spec] * len(deltas),
        out_specs=[img_spec] * len(images),
        compiler_params=pltpu.CompilerParams(
            dimension_semantics=("parallel", "parallel", "parallel"),
            vmem_limit_bytes=32 * 1024 * 1024,
        ),
    )(*imgs3d, *dels3d)

    return [o.reshape(B, C, H, W) for o in outs]


class ScaledInputModelPallas:
    """JAX/Pallas port of ScaledInputModel's forward-pass preprocessing."""

    def __init__(self, make_unit_input=False, variable_change=False, eps_box=0.0):
        self.make_unit_input = make_unit_input
        self.var_change = variable_change
        self.eps_box = eps_box

    def __call__(self, image1, image2, delta1=None, delta2=None):
        kw = dict(var_change=self.var_change,
                  make_unit_input=self.make_unit_input,
                  eps_box=self.eps_box)

        # PyTorch delta semantics:
        #   delta1 -> image1; and also -> image2 iff delta2 is None.
        #   delta2 -> image2.
        if tuple(image1.shape) == tuple(image2.shape):
            if delta1 is not None and delta2 is None:
                deltas, idx = [delta1], (0, 0)            # shared delta
            elif delta1 is not None and delta2 is not None:
                deltas, idx = [delta1, delta2], (0, 1)
            elif delta1 is None and delta2 is not None:
                deltas, idx = [delta2], (None, 0)
            else:
                deltas, idx = [], (None, None)
            out1, out2 = _preprocess_images([image1, image2], deltas, idx, **kw)
        else:
            # Fallback (different shapes): process each image independently.
            d1 = delta1
            d2 = delta2 if delta2 is not None else delta1
            out1 = _preprocess_images([image1],
                                      [] if d1 is None else [d1],
                                      (None,) if d1 is None else (0,), **kw)[0]
            out2 = _preprocess_images([image2],
                                      [] if d2 is None else [d2],
                                      (None,) if d2 is None else (0,), **kw)[0]

        # TODO(synk): ownutilities.compute_flow on an externally loaded pretrained
        # optical-flow network has no Pallas equivalent; returning the preprocessed
        # (rescaled) image pair that would be fed to that network.
        return out1, out2


def _reference(image1, image2, delta1, delta2, *, make_unit_input, var_change, eps_box):
    """Pure-JAX reference of the same preprocessing, for correctness check."""
    B1, B2 = image1.shape[0], image2.shape[0]
    if delta1 is not None:
        image1 = image1 + jnp.broadcast_to(delta1, (B1,) + delta1.shape[1:])
        if delta2 is None:
            image2 = image2 + jnp.broadcast_to(delta1, (B2,) + delta1.shape[1:])
    if delta2 is not None:
        image2 = image2 + jnp.broadcast_to(delta2, (B2,) + delta2.shape[1:])
    if var_change:
        image1 = (0.5 / (1.0 - eps_box)) * (jnp.tanh(image1) + (1.0 - eps_box))
        image2 = (0.5 / (1.0 - eps_box)) * (jnp.tanh(image2) + (1.0 - eps_box))
    image1 = jnp.clip(image1, 0.0, 1.0)
    image2 = jnp.clip(image2, 0.0, 1.0)
    if make_unit_input:
        image1 = 255.0 * image1
        image2 = 255.0 * image2
    return image1, image2


if __name__ == "__main__":
    key = jax.random.PRNGKey(0)
    k1, k2, k3, k4 = jax.random.split(key, 4)

    B, C, H, W = 2, 3, 16, 16
    image1 = jax.random.uniform(k1, (B, C, H, W), dtype=jnp.float32)
    image2 = jax.random.uniform(k2, (B, C, H, W), dtype=jnp.float32)
    delta1 = 0.05 * jax.random.normal(k3, (1, C, H, W), dtype=jnp.float32)
    delta2 = 0.05 * jax.random.normal(k4, (1, C, H, W), dtype=jnp.float32)

    model = ScaledInputModelPallas(make_unit_input=True,
                                   variable_change=True,
                                   eps_box=0.01)

    cases = [
        ("shared_delta", delta1, None),
        ("both_deltas", delta1, delta2),
        ("delta2_only", None, delta2),
        ("no_delta", None, None),
    ]
    for name, d1, d2 in cases:
        out1, out2 = model(image1, image2, delta1=d1, delta2=d2)
        out1 = jax.block_until_ready(out1)
        out2 = jax.block_until_ready(out2)
        ref1, ref2 = _reference(image1, image2, d1, d2,
                                make_unit_input=True, var_change=True, eps_box=0.01)
        assert out1.shape == (B, C, H, W) and out2.shape == (B, C, H, W), name
        assert jnp.allclose(out1, ref1, atol=1e-5, rtol=1e-5), name
        assert jnp.allclose(out2, ref2, atol=1e-5, rtol=1e-5), name

    print("KERNEL_OK")
</pallas_src>

<mosaic_0001>
module attributes {stable_mosaic.version = 11 : i64} {
  func.func @kernel(%arg0: i32, %arg1: i32, %arg2: i32, %arg3: memref<1x3x256xf32, #tpu.memory_space<vmem>>, %arg4: memref<1x3x256xf32, #tpu.memory_space<vmem>>, %arg5: memref<1x3x256xf32, #tpu.memory_space<vmem>>, %arg6: memref<1x3x256xf32, #tpu.memory_space<vmem>>, %arg7: memref<1x3x256xf32, #tpu.memory_space<vmem>>) attributes {dimension_semantics = [#tpu.dimension_semantics<parallel>, #tpu.dimension_semantics<parallel>, #tpu.dimension_semantics<parallel>], iteration_bounds = array<i64: 1, 1, 2>, scalar_prefetch = 0 : i64, scratch_operands = 0 : i64, tpu.core_type = #tpu.core_type<tc>, window_params = [{transform_indices = @transform_0, window_bounds = array<i64: 1, 3, 256>}, {transform_indices = @transform_1, window_bounds = array<i64: 1, 3, 256>}, {transform_indices = @transform_2, window_bounds = array<i64: 1, 3, 256>}, {transform_indices = @transform_3, window_bounds = array<i64: 1, 3, 256>}, {transform_indices = @transform_4, window_bounds = array<i64: 1, 3, 256>}]} {
    %c0 = arith.constant 0 : index
    %c0_0 = arith.constant 0 : index
    %c0_1 = arith.constant 0 : index
    %0 = vector.load %arg5[%c0, %c0_0, %c0_1] : memref<1x3x256xf32, #tpu.memory_space<vmem>>, vector<1x3x256xf32>
    %c0_2 = arith.constant 0 : index
    %c0_3 = arith.constant 0 : index
    %c0_4 = arith.constant 0 : index
    %1 = vector.load %arg3[%c0_2, %c0_3, %c0_4] : memref<1x3x256xf32, #tpu.memory_space<vmem>>, vector<1x3x256xf32>
    %2 = arith.addf %1, %0 : vector<1x3x256xf32>
    %3 = math.tanh %2 : vector<1x3x256xf32>
    %cst = arith.constant 9.900000e-01 : f32
    %4 = vector.broadcast %cst : f32 to vector<1x3x256xf32>
    %5 = arith.addf %3, %4 : vector<1x3x256xf32>
    %cst_5 = arith.constant 0.50505048 : f32
    %6 = vector.broadcast %cst_5 : f32 to vector<1x3x256xf32>
    %7 = arith.mulf %6, %5 : vector<1x3x256xf32>
    %cst_6 = arith.constant 0.000000e+00 : f32
    %cst_7 = arith.constant 1.000000e+00 : f32
    %8 = vector.broadcast %cst_6 : f32 to vector<1x3x256xf32>
    %9 = arith.maximumf %8, %7 : vector<1x3x256xf32>
    %10 = vector.broadcast %cst_7 : f32 to vector<1x3x256xf32>
    %11 = arith.minimumf %10, %9 : vector<1x3x256xf32>
    %cst_8 = arith.constant 2.550000e+02 : f32
    %12 = vector.broadcast %cst_8 : f32 to vector<1x3x256xf32>
    %13 = arith.mulf %11, %12 : vector<1x3x256xf32>
    %c0_9 = arith.constant 0 : index
    %c0_10 = arith.constant 0 : index
    %c0_11 = arith.constant 0 : index
    %14 = vector.load %arg6[%c0_9, %c0_10, %c0_11] : memref<1x3x256xf32, #tpu.memory_space<vmem>>, vector<1x3x256xf32>
    tpu.vector_store %arg6[%c0_9, %c0_10, %c0_11], %13 {strides = array<i32>} : memref<1x3x256xf32, #tpu.memory_space<vmem>>, vector<1x3x256xf32>,
    %c0_12 = arith.constant 0 : index
    %c0_13 = arith.constant 0 : index
    %c0_14 = arith.constant 0 : index
    %15 = vector.load %arg4[%c0_12, %c0_13, %c0_14] : memref<1x3x256xf32, #tpu.memory_space<vmem>>, vector<1x3x256xf32>
    %16 = arith.addf %15, %0 : vector<1x3x256xf32>
    %17 = math.tanh %16 : vector<1x3x256xf32>
    %cst_15 = arith.constant 9.900000e-01 : f32
    %18 = vector.broadcast %cst_15 : f32 to vector<1x3x256xf32>
    %19 = arith.addf %17, %18 : vector<1x3x256xf32>
    %cst_16 = arith.constant 0.50505048 : f32
    %20 = vector.broadcast %cst_16 : f32 to vector<1x3x256xf32>
    %21 = arith.mulf %20, %19 : vector<1x3x256xf32>
    %cst_17 = arith.constant 0.000000e+00 : f32
    %cst_18 = arith.constant 1.000000e+00 : f32
    %22 = vector.broadcast %cst_17 : f32 to vector<1x3x256xf32>
    %23 = arith.maximumf %22, %21 : vector<1x3x256xf32>
    %24 = vector.broadcast %cst_18 : f32 to vector<1x3x256xf32>
    %25 = arith.minimumf %24, %23 : vector<1x3x256xf32>
    %cst_19 = arith.constant 2.550000e+02 : f32
    %26 = vector.broadcast %cst_19 : f32 to vector<1x3x256xf32>
    %27 = arith.mulf %25, %26 : vector<1x3x256xf32>
    %c0_20 = arith.constant 0 : index
    %c0_21 = arith.constant 0 : index
    %c0_22 = arith.constant 0 : index
    %28 = vector.load %arg7[%c0_20, %c0_21, %c0_22] : memref<1x3x256xf32, #tpu.memory_space<vmem>>, vector<1x3x256xf32>
    tpu.vector_store %arg7[%c0_20, %c0_21, %c0_22], %27 {strides = array<i32>} : memref<1x3x256xf32, #tpu.memory_space<vmem>>, vector<1x3x256xf32>,
    return
  }
  func.func @transform_0(%arg0: i32, %arg1: i32, %arg2: i32) -> (i32, i32, i32) {
    %c0_i32 = arith.constant 0 : i32
    return %arg2, %arg0, %arg1 : i32, i32, i32
  }
  func.func @transform_1(%arg0: i32, %arg1: i32, %arg2: i32) -> (i32, i32, i32) {
    %c0_i32 = arith.constant 0 : i32
    return %arg2, %arg0, %arg1 : i32, i32, i32
  }
  func.func @transform_2(%arg0: i32, %arg1: i32, %arg2: i32) -> (i32, i32, i32) {
    %c0_i32 = arith.constant 0 : i32
    %c0_i32_0 = arith.constant 0 : i32
    return %c0_i32, %arg0, %arg1 : i32, i32, i32
  }
  func.func @transform_3(%arg0: i32, %arg1: i32, %arg2: i32) -> (i32, i32, i32) {
    %c0_i32 = arith.constant 0 : i32
    return %arg2, %arg0, %arg1 : i32, i32, i32
  }
  func.func @transform_4(%arg0: i32, %arg1: i32, %arg2: i32) -> (i32, i32, i32) {
    %c0_i32 = arith.constant 0 : i32
    return %arg2, %arg0, %arg1 : i32, i32, i32
  }
}

</mosaic_0001>

<bundles_post_ra>
// kernel: tpu_custom_call.1
= control target key start
LH: loop header
LB: loop body
LE: loop exit
PB: predicated region body
PF: predicated region fallthrough
CT: control target
= control target key end

     0   :  { %s727_s15 = smov 0   ;;  %s729_s16 = smov 0   ;;  %s769_s0 = inlined_call_operand.vmem [shape: f32[2,3,256], index: 0, kind: input, shape index: {}]   ;;  %s770_s1 = inlined_call_operand.vmem [shape: f32[2,3,256], index: 1, kind: input, shape index: {}]   ;;  %s771_s2 = inlined_call_operand.vmem [shape: f32[1,3,256], index: 2, kind: input, shape index: {}]   ;;  %s772_s3 = inlined_call_operand.vmem [shape: f32[2,3,256], index: 3, kind: output, shape index: {0}]   ;;  %s773_s4 = inlined_call_operand.vmem [shape: f32[2,3,256], index: 4, kind: output, shape index: {1}]  }
   0x1   :  { %s731_s17 = smov 0  }
   0x2 LB: > { %s27_s18 = sadd.s32 1, %s696_s16  ;;  %p635_p0 = scmp.ge.s32.totalorder %s700_s17, 1  ;;  %s700_s17 = sphi %s731_s17, %s15_s17   ;;  %s696_s16 = sphi %s729_s16, %s775_s16   ;;  %s692_s15 = sphi %s727_s15, %s774_s15  }
   0x3   : > { %p28_p1 = scmp.ge.s32.totalorder %s27_s18, 2  ;;  %p245_p2 = scmp.lt.s32.totalorder %s700_s17, 3 }
   0x5   : > { %s777_s18 = smov (%p28_p1, %s27_s18), 0  ;;  %p246_p3 = pnand %p635_p0, %p245_p2 }
   0x6   : > { %p323_p4 = scmp.lt.s32.totalorder (!%p246_p3), %s692_s15, 1  ;;  %v388_v0 = vld [vmem:[%s771_s2] sm:$0x77] (!%p246_p3) }
   0x7   : > { %249 = sbr.rel (%p246_p3) target bundleno = 43 (0x2b), region = 32 }
   0xe   : > { %s779_s15 = smov (!%p323_p4, %s692_s15), 1 }
   0xf   : > { %s646_s19 = sshll.u32 %s779_s15, 3 }
  0x10   : > { %s334_s24 = scalar_lea.vmem %s769_s0, %s646_s19  ;;  %s348_s27 = scalar_lea.vmem %s770_s1, %s646_s19 }
  0x11   : > { %v389_v1 = vld [vmem:[%s334_s24] sm:$0x77]  ;;  %s372_s30 = scalar_lea.vmem %s772_s3, %s646_s19  ;;  %s386_s7 = scalar_lea.vmem %s773_s4, %s646_s19 }
  0x12   : > { %v390_v2 = vadd.f32 %v389_v1, %v388_v0  ;;  %v398_v3 = vld [vmem:[%s348_s27] sm:$0x77] }
  0x13   : > { %v399_v4 = vadd.f32 %v398_v3, %v388_v0 }
  0x14   : > { %674 = vtanh.f32 %v390_v2 }
  0x15   : > { %676 = vtanh.f32 %v399_v4 }
  0x1e   : > { %v675_v5 = vpop.eup %674 }
  0x1f   : > { %v677_v6 = vpop.eup %676  ;;  %v392_v7 = vadd.f32 0.99, %v675_v5 }
  0x20   : > { %v401_v8 = vadd.f32 0.99, %v677_v6 }
  0x21   : > { %v393_v9 = vmul.f32 0.5050505, %v392_v7 }
  0x22   : > { %v402_v10 = vmul.f32 0.5050505, %v401_v8 }
  0x23   : > { %v394_v11 = vmax.f32 %v393_v9, 0.0 }
  0x24   : > { %v403_v12 = vmax.f32 %v402_v10, 0.0 }
  0x25   : > { %v395_v13 = vmin.f32 %v394_v11, 1.0 }
  0x26   : > { %v404_v14 = vmin.f32 %v403_v12, 1.0 }
  0x27   : > { %v396_v15 = vmul.f32 255.0, %v395_v13 }
  0x28   : > { %v405_v16 = vmul.f32 255.0, %v404_v14 }
  0x29   : > { %397 = vst [vmem:[%s372_s30] sm:$0x77] %v396_v15 }
  0x2a   : > { %406 = vst [vmem:[%s386_s7] sm:$0x77] %v405_v16 }
  0x2b PF: > { %s15_s17 = sadd.s32 1, %s700_s17   ;;  %s774_s15 = smov %s696_s16 }
  0x2c   : > { %p12_p5 = scmp.ge.s32.totalorder %s15_s17, 4   ;;  %s775_s16 = smov %s777_s18 }
  0x2e   :  { %14 = sbr.rel (!%p12_p5) target bundleno = 2 (0x2), region = 80 }

</bundles_post_ra>
